<compile_context>
chip_gen: v7x
topology: tpu7x:2x2x1
jax: 0.10.0
libtpu: 0.0.40
codegen_flags: <defaults>
</compile_context>

<pallas_src>
import math

import jax
import jax.numpy as jnp
from jax.experimental import pallas as pl
from jax.experimental.pallas import tpu as pltpu

_SQRT1_2 = 0.7071067811865476


def _erf_approx(v):
    # Abramowitz & Stegun 7.1.26: |abs error| <= 1.5e-7 (f32 rounding level).
    p = 0.3275911
    a1, a2, a3, a4, a5 = (0.254829592, -0.284496736, 1.421413741,
                          -1.453152027, 1.061405429)
    av = jnp.abs(v)
    t = 1.0 / (1.0 + p * av)
    poly = ((((a5 * t + a4) * t + a3) * t + a2) * t + a1) * t
    y = 1.0 - poly * jnp.exp(-av * av)
    return jnp.where(v < 0.0, -y, y)


def _gelu_exact(v):
    # Matches torch.nn.GELU() default (exact, erf-based) to f32 precision.
    return 0.5 * v * (1.0 + _erf_approx(v * _SQRT1_2))


def _sero_kernel(x_ref, w1_ref, b1_ref, w2_ref, b2_ref, out_ref, att_ref):
    x = x_ref[...]                                   # (Mc, N, D), VMEM-resident tile
    n_nodes = x.shape[1]
    inv_n = 1.0 / n_nodes

    # squeeze: mean over the node axis
    readout = jnp.sum(x, axis=1) * inv_n             # (Mc, D)

    # embed: Linear (+ folded eval-mode BatchNorm) + exact GELU, batched over all Mc rows
    h = jnp.dot(readout, w1_ref[...], preferred_element_type=jnp.float32) + b1_ref[...]
    h = _gelu_exact(h)                               # (Mc, U)

    # attend: Linear + sigmoid
    logits = jnp.dot(h, w2_ref[...], preferred_element_type=jnp.float32) + b2_ref[...]
    att = jax.nn.sigmoid(logits)                     # (Mc, N)

    # excite: attention-weighted mean over the node axis (reuses the same VMEM x tile)
    weighted = jnp.sum(x * att[:, :, None], axis=1) * inv_n   # (Mc, D)

    out_ref[...] = weighted.astype(out_ref.dtype)
    att_ref[...] = att.astype(att_ref.dtype)


def _sero_pallas(x2, w1_eff, b1_eff, w2_t, b2_r, *, block_m=None):
    """x2: (M, N, D) with M = T*B. Returns ((M, D) weighted readout, (M, N) attention)."""
    M, N, D = x2.shape
    U = w1_eff.shape[1]
    if block_m is None:
        block_m = M if M <= 256 else 256
    block_m = min(block_m, M)
    assert block_m == M or block_m % 8 == 0, "block_m must be a multiple of 8 (sublane dim)"

    grid = (pl.cdiv(M, block_m),)
    return pl.pallas_call(
        _sero_kernel,
        out_shape=(
            jax.ShapeDtypeStruct((M, D), x2.dtype),
            jax.ShapeDtypeStruct((M, N), x2.dtype),
        ),
        grid=grid,
        in_specs=[
            pl.BlockSpec((block_m, N, D), lambda i: (i, 0, 0)),   # x tile (read once)
            pl.BlockSpec((D, U), lambda i: (0, 0)),               # W1 with BN folded (resident)
            pl.BlockSpec((1, U), lambda i: (0, 0)),               # b1 with BN folded
            pl.BlockSpec((U, N), lambda i: (0, 0)),               # W2 (resident)
            pl.BlockSpec((1, N), lambda i: (0, 0)),               # b2
        ],
        out_specs=(
            pl.BlockSpec((block_m, D), lambda i: (i, 0)),         # weighted node-mean
            pl.BlockSpec((block_m, N), lambda i: (i, 0)),         # attention logits->probs
        ),
        compiler_params=pltpu.CompilerParams(
            dimension_semantics=("parallel",)),
    )(x2, w1_eff, b1_eff, w2_t, b2_r)


def module_sero_forward(x, params, *, node_axis=2, eps=1e-5, block_m=None):
    """x: (T, B, N, D). Returns ((T, B, D), (B, T, N)) matching ModuleSERO.forward."""
    # TODO(synk): only node_axis=2 with 4-D x (the layout the model uses) is supported;
    # for that case the module's permute_idx is the identity permutation.
    assert node_axis == 2 and x.ndim == 4
    w1, b1, gamma, beta, run_mean, run_var, w2, b2 = params

    # Fold eval-mode BatchNorm1d into the first Linear: BN(r @ W1^T + b1) = r @ W1' + b1'
    scale = gamma * jax.lax.rsqrt(run_var + eps)
    shift = beta - run_mean * scale
    w1_eff = jnp.transpose(w1) * scale[None, :]      # (D, U)
    b1_eff = (b1 * scale + shift)[None, :]           # (1, U)
    w2_t = jnp.transpose(w2)                         # (U, N)
    b2_r = b2[None, :]                               # (1, N)

    T, B, N, D = x.shape
    x2 = x.reshape(T * B, N, D)
    out2, att2 = _sero_pallas(x2, w1_eff, b1_eff, w2_t, b2_r, block_m=block_m)
    out = out2.reshape(T, B, D)
    att = att2.reshape(T, B, N)
    # TODO(synk): nn.Dropout(0.1) on the attention is identity in eval/inference mode.
    return out, jnp.transpose(att, (1, 0, 2))        # ((T, B, D), (B, T, N))


def sero_reference(x, params, eps=1e-5):
    """Pure-JAX reference (eval-mode BN / dropout) for correctness checking."""
    w1, b1, gamma, beta, run_mean, run_var, w2, b2 = params
    T, B, N, D = x.shape
    r = x.mean(axis=2).reshape(T * B, D)
    h = r @ w1.T + b1
    h = (h - run_mean) * (gamma / jnp.sqrt(run_var + eps)) + beta
    h = jax.nn.gelu(h, approximate=False)
    a = jax.nn.sigmoid(h @ w2.T + b2).reshape(T, B, N)
    out = (x * a[..., None]).mean(axis=2)
    return out, jnp.transpose(a, (1, 0, 2))


def init_sero_params(key, hidden_dim, input_dim, upscale=1.0):
    """Deterministic params mimicking PyTorch default inits (eval-mode BN stats)."""
    U = round(upscale * hidden_dim)
    ks = jax.random.split(key, 8)
    k1 = 1.0 / math.sqrt(hidden_dim)
    w1 = jax.random.uniform(ks[0], (U, hidden_dim), jnp.float32, -k1, k1)
    b1 = jax.random.uniform(ks[1], (U,), jnp.float32, -k1, k1)
    gamma = jax.random.uniform(ks[2], (U,), jnp.float32, 0.5, 1.5)
    beta = 0.1 * jax.random.normal(ks[3], (U,), jnp.float32)
    run_mean = 0.1 * jax.random.normal(ks[4], (U,), jnp.float32)
    run_var = jax.random.uniform(ks[5], (U,), jnp.float32, 0.5, 1.5)
    k2 = 1.0 / math.sqrt(U)
    w2 = jax.random.uniform(ks[6], (input_dim, U), jnp.float32, -k2, k2)
    b2 = jax.random.uniform(ks[7], (input_dim,), jnp.float32, -k2, k2)
    return (w1, b1, gamma, beta, run_mean, run_var, w2, b2)


if __name__ == "__main__":
    # Small shapes consistent with the module: x = (T, B, N, D), node_axis=2,
    # hidden_dim=D=32, input_dim=N=16 nodes, seq T=8, batch B=2, upscale=1.0.
    T, B, N, D = 8, 2, 16, 32
    upscale = 1.0

    key = jax.random.PRNGKey(0)
    kx, kp = jax.random.split(key)
    x = jax.random.normal(kx, (T, B, N, D), dtype=jnp.float32)
    params = init_sero_params(kp, hidden_dim=D, input_dim=N, upscale=upscale)

    out, att = module_sero_forward(x, params, block_m=8)   # grid=(2,), Mc=8 sublane-aligned
    out, att = jax.block_until_ready((out, att))
    assert out.shape == (T, B, D), out.shape
    assert att.shape == (B, T, N), att.shape

    out_ref, att_ref = sero_reference(x, params)
    assert jnp.allclose(out, out_ref, rtol=1e-4, atol=1e-4)
    assert jnp.allclose(att, att_ref, rtol=1e-4, atol=1e-4)
    print("KERNEL_OK")
</pallas_src>

<mosaic_0001>
module attributes {stable_mosaic.version = 11 : i64} {
  func.func @_sero_kernel(%arg0: i32, %arg1: memref<8x16x32xf32, #tpu.memory_space<vmem>>, %arg2: memref<32x32xf32, #tpu.memory_space<vmem>>, %arg3: memref<1x32xf32, #tpu.memory_space<vmem>>, %arg4: memref<32x16xf32, #tpu.memory_space<vmem>>, %arg5: memref<1x16xf32, #tpu.memory_space<vmem>>, %arg6: memref<8x32xf32, #tpu.memory_space<vmem>>, %arg7: memref<8x16xf32, #tpu.memory_space<vmem>>) attributes {dimension_semantics = [#tpu.dimension_semantics<parallel>], iteration_bounds = array<i64: 2>, scalar_prefetch = 0 : i64, scratch_operands = 0 : i64, tpu.core_type = #tpu.core_type<tc>, window_params = [{transform_indices = @transform_0, window_bounds = array<i64: 8, 16, 32>}, {pipeline_mode = #tpu.pipeline_mode<synchronous>, transform_indices = @transform_1, window_bounds = array<i64: 32, 32>}, {pipeline_mode = #tpu.pipeline_mode<synchronous>, transform_indices = @transform_2, window_bounds = array<i64: 1, 32>}, {pipeline_mode = #tpu.pipeline_mode<synchronous>, transform_indices = @transform_3, window_bounds = array<i64: 32, 16>}, {pipeline_mode = #tpu.pipeline_mode<synchronous>, transform_indices = @transform_4, window_bounds = array<i64: 1, 16>}, {transform_indices = @transform_5, window_bounds = array<i64: 8, 32>}, {transform_indices = @transform_6, window_bounds = array<i64: 8, 16>}]} {
    %c0 = arith.constant 0 : index
    %c0_0 = arith.constant 0 : index
    %c0_1 = arith.constant 0 : index
    %0 = vector.load %arg1[%c0, %c0_0, %c0_1] : memref<8x16x32xf32, #tpu.memory_space<vmem>>, vector<8x16x32xf32>
    %cst = arith.constant dense<0.000000e+00> : vector<8x32xf32>
    %1 = vector.multi_reduction <add>, %0, %cst [1] : vector<8x16x32xf32> to vector<8x32xf32>
    %cst_2 = arith.constant 6.250000e-02 : f32
    %2 = vector.broadcast %cst_2 : f32 to vector<8x32xf32>
    %3 = arith.mulf %1, %2 : vector<8x32xf32>
    %c0_3 = arith.constant 0 : index
    %c0_4 = arith.constant 0 : index
    %4 = vector.load %arg2[%c0_3, %c0_4] : memref<32x32xf32, #tpu.memory_space<vmem>>, vector<32x32xf32>
    %cst_5 = arith.constant dense<0.000000e+00> : vector<8x32xf32>
    %5 = tpu.matmul %3, %4, %cst_5 {dimension_numbers = #tpu.dot_dimension_numbers<[1], [0], [0], [1], [0, 0, 1, 1], [], []>} : vector<8x32xf32>, vector<32x32xf32>, vector<8x32xf32> -> vector<8x32xf32>
    %c0_6 = arith.constant 0 : index
    %c0_7 = arith.constant 0 : index
    %6 = vector.load %arg3[%c0_6, %c0_7] : memref<1x32xf32, #tpu.memory_space<vmem>>, vector<1x32xf32>
    %7 = vector.broadcast %6 : vector<1x32xf32> to vector<8x32xf32>
    %8 = arith.addf %5, %7 : vector<8x32xf32>
    %cst_8 = arith.constant 5.000000e-01 : f32
    %9 = vector.broadcast %cst_8 : f32 to vector<8x32xf32>
    %10 = arith.mulf %9, %8 : vector<8x32xf32>
    %cst_9 = arith.constant 0.707106769 : f32
    %11 = vector.broadcast %cst_9 : f32 to vector<8x32xf32>
    %12 = arith.mulf %8, %11 : vector<8x32xf32>
    %13 = math.absf %12 : vector<8x32xf32>
    %cst_10 = arith.constant 0.327591091 : f32
    %14 = vector.broadcast %cst_10 : f32 to vector<8x32xf32>
    %15 = arith.mulf %14, %13 : vector<8x32xf32>
    %cst_11 = arith.constant 1.000000e+00 : f32
    %16 = vector.broadcast %cst_11 : f32 to vector<8x32xf32>
    %17 = arith.addf %16, %15 : vector<8x32xf32>
    %cst_12 = arith.constant 1.000000e+00 : f32
    %18 = vector.broadcast %cst_12 : f32 to vector<8x32xf32>
    %19 = arith.divf %18, %17 : vector<8x32xf32>
    %cst_13 = arith.constant 1.06140542 : f32
    %20 = vector.broadcast %cst_13 : f32 to vector<8x32xf32>
    %21 = arith.mulf %20, %19 : vector<8x32xf32>
    %cst_14 = arith.constant -1.45315206 : f32
    %22 = vector.broadcast %cst_14 : f32 to vector<8x32xf32>
    %23 = arith.addf %21, %22 : vector<8x32xf32>
    %24 = arith.mulf %23, %19 : vector<8x32xf32>
    %cst_15 = arith.constant 1.42141378 : f32
    %25 = vector.broadcast %cst_15 : f32 to vector<8x32xf32>
    %26 = arith.addf %24, %25 : vector<8x32xf32>
    %27 = arith.mulf %26, %19 : vector<8x32xf32>
    %cst_16 = arith.constant -0.284496725 : f32
    %28 = vector.broadcast %cst_16 : f32 to vector<8x32xf32>
    %29 = arith.addf %27, %28 : vector<8x32xf32>
    %30 = arith.mulf %29, %19 : vector<8x32xf32>
    %cst_17 = arith.constant 0.254829586 : f32
    %31 = vector.broadcast %cst_17 : f32 to vector<8x32xf32>
    %32 = arith.addf %30, %31 : vector<8x32xf32>
    %33 = arith.mulf %32, %19 : vector<8x32xf32>
    %cst_18 = arith.constant 0.000000e+00 : f32
    %34 = vector.broadcast %cst_18 : f32 to vector<8x32xf32>
    %35 = arith.subf %34, %13 : vector<8x32xf32>
    %36 = arith.mulf %35, %13 : vector<8x32xf32>
    %37 = math.exp %36 : vector<8x32xf32>
    %38 = arith.mulf %33, %37 : vector<8x32xf32>
    %cst_19 = arith.constant 1.000000e+00 : f32
    %39 = vector.broadcast %cst_19 : f32 to vector<8x32xf32>
    %40 = arith.subf %39, %38 : vector<8x32xf32>
    %cst_20 = arith.constant 0.000000e+00 : f32
    %41 = vector.broadcast %cst_20 : f32 to vector<8x32xf32>
    %42 = arith.cmpf olt, %12, %41 : vector<8x32xf32>
    %cst_21 = arith.constant 0.000000e+00 : f32
    %43 = vector.broadcast %cst_21 : f32 to vector<8x32xf32>
    %44 = arith.subf %43, %40 : vector<8x32xf32>
    %45 = arith.select %42, %44, %40 : vector<8x32xi1>, vector<8x32xf32>
    %cst_22 = arith.constant 1.000000e+00 : f32
    %46 = vector.broadcast %cst_22 : f32 to vector<8x32xf32>
    %47 = arith.addf %46, %45 : vector<8x32xf32>
    %48 = arith.mulf %10, %47 : vector<8x32xf32>
    %c0_23 = arith.constant 0 : index
    %c0_24 = arith.constant 0 : index
    %49 = vector.load %arg4[%c0_23, %c0_24] : memref<32x16xf32, #tpu.memory_space<vmem>>, vector<32x16xf32>
    %cst_25 = arith.constant dense<0.000000e+00> : vector<8x16xf32>
    %50 = tpu.matmul %48, %49, %cst_25 {dimension_numbers = #tpu.dot_dimension_numbers<[1], [0], [0], [1], [0, 0, 1, 1], [], []>} : vector<8x32xf32>, vector<32x16xf32>, vector<8x16xf32> -> vector<8x16xf32>
    %c0_26 = arith.constant 0 : index
    %c0_27 = arith.constant 0 : index
    %51 = vector.load %arg5[%c0_26, %c0_27] : memref<1x16xf32, #tpu.memory_space<vmem>>, vector<1x16xf32>
    %52 = vector.broadcast %51 : vector<1x16xf32> to vector<8x16xf32>
    %53 = arith.addf %50, %52 : vector<8x16xf32>
    %54 = arith.negf %53 : vector<8x16xf32>
    %55 = math.exp %54 : vector<8x16xf32>
    %cst_28 = arith.constant 1.000000e+00 : f32
    %56 = vector.broadcast %cst_28 : f32 to vector<8x16xf32>
    %57 = arith.addf %56, %55 : vector<8x16xf32>
    %58 = arith.divf %56, %57 : vector<8x16xf32>
    %59 = vector.shape_cast %58 : vector<8x16xf32> to vector<8x16x1xf32>
    %60 = vector.broadcast %59 : vector<8x16x1xf32> to vector<8x16x32xf32>
    %61 = arith.mulf %0, %60 : vector<8x16x32xf32>
    %cst_29 = arith.constant dense<0.000000e+00> : vector<8x32xf32>
    %62 = vector.multi_reduction <add>, %61, %cst_29 [1] : vector<8x16x32xf32> to vector<8x32xf32>
    %cst_30 = arith.constant 6.250000e-02 : f32
    %63 = vector.broadcast %cst_30 : f32 to vector<8x32xf32>
    %64 = arith.mulf %62, %63 : vector<8x32xf32>
    %c0_31 = arith.constant 0 : index
    %c0_32 = arith.constant 0 : index
    %65 = vector.load %arg6[%c0_31, %c0_32] : memref<8x32xf32, #tpu.memory_space<vmem>>, vector<8x32xf32>
    tpu.vector_store %arg6[%c0_31, %c0_32], %64 {strides = array<i32>} : memref<8x32xf32, #tpu.memory_space<vmem>>, vector<8x32xf32>,
    %c0_33 = arith.constant 0 : index
    %c0_34 = arith.constant 0 : index
    %66 = vector.load %arg7[%c0_33, %c0_34] : memref<8x16xf32, #tpu.memory_space<vmem>>, vector<8x16xf32>
    tpu.vector_store %arg7[%c0_33, %c0_34], %58 {strides = array<i32>} : memref<8x16xf32, #tpu.memory_space<vmem>>, vector<8x16xf32>,
    return
  }
  func.func @transform_0(%arg0: i32) -> (i32, i32, i32) {
    %c0_i32 = arith.constant 0 : i32
    %c0_i32_0 = arith.constant 0 : i32
    %c0_i32_1 = arith.constant 0 : i32
    return %arg0, %c0_i32, %c0_i32_0 : i32, i32, i32
  }
  func.func @transform_1(%arg0: i32) -> (i32, i32) {
    %c0_i32 = arith.constant 0 : i32
    %c0_i32_0 = arith.constant 0 : i32
    %c0_i32_1 = arith.constant 0 : i32
    return %c0_i32, %c0_i32_0 : i32, i32
  }
  func.func @transform_2(%arg0: i32) -> (i32, i32) {
    %c0_i32 = arith.constant 0 : i32
    %c0_i32_0 = arith.constant 0 : i32
    %c0_i32_1 = arith.constant 0 : i32
    return %c0_i32, %c0_i32_0 : i32, i32
  }
  func.func @transform_3(%arg0: i32) -> (i32, i32) {
    %c0_i32 = arith.constant 0 : i32
    %c0_i32_0 = arith.constant 0 : i32
    %c0_i32_1 = arith.constant 0 : i32
    return %c0_i32, %c0_i32_0 : i32, i32
  }
  func.func @transform_4(%arg0: i32) -> (i32, i32) {
    %c0_i32 = arith.constant 0 : i32
    %c0_i32_0 = arith.constant 0 : i32
    %c0_i32_1 = arith.constant 0 : i32
    return %c0_i32, %c0_i32_0 : i32, i32
  }
  func.func @transform_5(%arg0: i32) -> (i32, i32) {
    %c0_i32 = arith.constant 0 : i32
    %c0_i32_0 = arith.constant 0 : i32
    return %arg0, %c0_i32 : i32, i32
  }
  func.func @transform_6(%arg0: i32) -> (i32, i32) {
    %c0_i32 = arith.constant 0 : i32
    %c0_i32_0 = arith.constant 0 : i32
    return %arg0, %c0_i32 : i32, i32
  }
}

</mosaic_0001>

<bundles_post_ra>
// kernel: tpu_custom_call.1
= control target key start
LH: loop header
LB: loop body
LE: loop exit
PB: predicated region body
PF: predicated region fallthrough
CT: control target
= control target key end

     0   :  { %12 = vsyncpa [#allocation3], 0  ;;  %s1605_s0 = inlined_call_operand.hbm [shape: f32[16,16,32], index: 0, kind: input, shape index: {}]   ;;  %s1606_s1 = inlined_call_operand.vmem [shape: f32[32,32], index: 1, kind: input, shape index: {}]   ;;  %s1607_s2 = inlined_call_operand.vmem [shape: f32[1,32], index: 2, kind: input, shape index: {}]   ;;  %s1608_s3 = inlined_call_operand.vmem [shape: f32[32,16], index: 3, kind: input, shape index: {}]   ;;  %s1609_s4 = inlined_call_operand.vmem [shape: f32[1,16], index: 4, kind: input, shape index: {}]   ;;  %s1610_s5 = inlined_call_operand.hbm [shape: f32[16,32], index: 5, kind: output, shape index: {0}]   ;;  %s1611_s6 = inlined_call_operand.hbm [shape: f32[16,16], index: 6, kind: output, shape index: {1}]  }
   0x1   :  { %14 = vsyncpa [#allocation3 + $0x1], 0 }
   0x2   :  { %15 = vsyncpa [#allocation4], 0 }
   0x3   :  { %17 = vsyncpa [#allocation4 + $0x1], 0 }
   0x4   :  { %18 = vsyncpa [#allocation7], 0 }
   0x5   :  { %20 = vsyncpa [#allocation7 + $0x1], 0  ;;  %s1244_s21 = smov 0   ;;  %s1246_s22 = smov 0  }
   0x6   :  { %s1248_s23 = smov 0   ;;  %s1250_s24 = smov 0  }
   0x7 LB: > { %s1265_s25 = sadd.s32 4294967295, %s1199_s24   ;;  %s939_s26 = sadd.s32 4294967294, %s1199_s24   ;;  %s1199_s24 = sphi %s1250_s24, %s1624_s24   ;;  %s1195_s23 = sphi %s1248_s23, %s1623_s23   ;;  %s1191_s22 = sphi %s1246_s22, %s1622_s22   ;;  %s1187_s21 = sphi %s1244_s21, %s1621_s21  }
   0x8   : > { %s1269_s27 = sadd.s32 1, %s1199_s24   ;;  %s33_s28 = sadd.s32 1, %s1195_s23 }
   0x9   : > { %s30_s29 = ssub.s32 %s1199_s24, %s1269_s27  ;;  %p40_p0 = scmp.ne.s32.totalorder %s1195_s23, %s1191_s22 }
   0xa   : > { %p31_p1 = scmp.eq.s32.totalorder %s30_s29, 0  ;;  %p41_p2 = scmp.eq.s32.totalorder %s1199_s24, 0 }
   0xb   : > { %p46_p3 = scmp.ne.s32.totalorder %s1191_s22, %s1187_s21  ;;  %p47_p4 = scmp.eq.s32.totalorder %s1265_s25, 0 }
   0xc   : > { %s1281_s30 = scalar_select %p31_p1, %s1195_s23, %s33_s28  }
   0xd   : > { %p1283_p5 = por %p41_p2, %p40_p0  ;;  %p1287_p6 = por %p47_p4, %p46_p3 }
   0xe   : > { %p154_p7 = scmp.eq.s32.totalorder %s1265_s25, 1  ;;  %p160_p8 = scmp.eq.s32.totalorder %s939_s26, 1 }
   0xf   : > { %p1024_p10 = scmp.lt.s32.totalorder %s1199_s24, 2  ;;  %s218_s11 = sand.u32 1, %s1195_s23  }
  0x10   : > { %p1294_p11 = por %p154_p7, %p40_p0  ;;  %p1298_p12 = por %p160_p8, %p46_p3 }
  0x11   : > { %s962_s12 = sshll.u32 %s1199_s24, 11  ;;  %s942_s13 = sshll.u32 %s218_s11, 7 }
  0x12   : > { %s1615_s9 = scalar_select %p1294_p11, 1, 0 }
  0x13   : > { %s1616_s10 = scalar_select %p1298_p12, 1, 0 }
  0x14   : > { %s1307_s16 = scalar_lea.hbm %s1605_s0, %s962_s12  ;;  %s222_s17 = scalar_lea.vmem [#allocation2], %s942_s13 }
  0x15   : > { %s230_s18 = sshll.u32 %s222_s17, 4  ;;  %p1311_p13 = pnand %p1024_p10, %p1283_p5  ;;  %s1315_s18 = int_to_ptr.vmem [resolvable:$true] %s230_s18 }
  0x16   : > { %s1317_s20 = scalar_lea.sflag [#allocation3], %s218_s11  ;;  %s1071_s26 = scalar_lea.hbm %s1307_s16, 2048 }
  0x17   : > { %p1072_p0 = scmp.ne.s32.totalorder %s1307_s16, %s1071_s26  ;;  %p1073_p1 = pneg %p1311_p13 }
  0x18   : > { %s1076_s7 = scalar_lea.hbm %s1605_s0, 4096  ;;  %p1077_p4 = scmp.lt.u32.totalorder %s1307_s16, %s1605_s0 }
  0x19   : > { %p1074_p2 = pnand %p1073_p1, %p1072_p0  ;;  %p1078_p5 = scmp.lt.u32.totalorder %s1076_s7, %s1071_s26 }
  0x1a   : > { %p1080_p8 = scmp.lt.u32.totalorder %s1071_s26, %s1307_s16 }
  0x1b   : > { %p1075_p3 = pneg %p1074_p2  ;;  %p1079_p7 = por %p1078_p5, %p1077_p4 }
  0x1d   : > { %p1081_p10 = por %p1080_p8, %p1079_p7 }
  0x1f   : > { %p1082_p9 = pnand %p1081_p10, %p1075_p3 }
  0x21   : > { %1085 = shalt.err (!%p1082_p9)
}
  0x22   : > { %s1086_s11 = scalar_lea.vmem %s1315_s18, 2048  ;;  %s1201_s14 = smov [#allocation2]  }
  0x23   : > { %p1087_p0 = scmp.ne.s32.totalorder %s1315_s18, %s1086_s11  ;;  %s1091_s15 = sshll.u32 %s1201_s14, 4  ;;  %s1092_s15 = int_to_ptr.vmem [resolvable:$false] %s1091_s15 }
  0x24   : > { %s1093_s17 = scalar_lea.vmem %s1092_s15, 4096  ;;  %p1094_p11 = scmp.lt.s32.totalorder %s1315_s18, %s1092_s15 }
  0x25   : > { %p1089_p2 = pnand %p1087_p0, %p1073_p1  ;;  %p1095_p4 = scmp.lt.s32.totalorder %s1093_s17, %s1086_s11 }
  0x27   : > { %p1090_p12 = pneg %p1089_p2  ;;  %p1096_p5 = por %p1095_p4, %p1094_p11 }
  0x29   : > { %p1097_p7 = pnand %p1096_p5, %p1090_p12 }
  0x2b   : > { %1100 = shalt.err (!%p1097_p7)
}
  0x2c   : > { %s1202_s26 = smov 128   ;;  %s1203_s28 = smov 8  }
  0x2d   : > { %1016 = dma.hbm_to_vmem [thread:$0]  (!%p1311_p13), %s1307_s16, 2048, %s1315_s18, %s1317_s20, %s1202_s26, %s1202_s26, %s1203_s28  }
  0x2e   : > { %p946_p9 = scmp.ge.s32.totalorder %s1199_s24, 1  ;;  %p238_p1 = scmp.lt.s32.totalorder %s1199_s24, 3 }
  0x30   : > { %p239_p3 = pnand %p946_p9, %p238_p1 }
  0x31   : > { %s1348_s29 = sand.u32 (!%p239_p3), 1, %s1191_s22  }
  0x32   : > { %242 = sbr.rel (%p239_p3) target bundleno = 771 (0x303), region = 40  ;;  %s947_s7 = sshll.u32 (!%p239_p3), %s1348_s29, 7 }
  0x33   : > { %s245_s12 = scalar_lea.sflag (!%p239_p3), [#allocation3], %s1348_s29  ;;  %s1352_s13 = scalar_lea.vmem (!%p239_p3), [#allocation2], %s947_s7 }
  0x39   : > { %1174 = dma.done.wait (%p1287_p6), %s245_s12, 2048  }
  0x3a   : > { %1176 = vsyncadd (%p1287_p6), %s245_s12, 4294965248  ;;  %v1204_v0 = vmov 0.0|0.0   ;;  %vm1205_vm0 = vmmov 0   ;;  %v1206_v1 = vmov 0.0   ;;  %vm299_vm1 = vcmask 261120   ;;  %v380_v2 = vld [vmem:[%s1606_s1] sm:$0xff] }
  0x3b   : > { %995 = vmatprep.subr.bf16.mxu0 %v1204_v0  ;;  %981 = vmatprep.mubr.msk.f32.mxu0 %vm1205_vm0, %v1206_v1  ;;  %v381_v3 = vld [vmem:[%s1606_s1 + $0x8] sm:$0xff]  ;;  %v382_v4 = vld [vmem:[%s1606_s1 + $0x10] sm:$0xff]  ;;  %v383_v6 = vld [vmem:[%s1606_s1 + $0x18] sm:$0xff]  ;;  %vm399_vm2 = vcmask 1041409   ;;  %vm401_vm3 = vcmask 1042434   ;;  %vm403_vm4 = vcmask 1043459  }
  0x3c   : > { %1001 = vmatprep.subr.bf16.mxu1 %v1204_v0  ;;  %992 = vmatprep.mubr.msk.f32.mxu1 %vm1205_vm0, %v1206_v1  ;;  %v996_v5 = vpack.c.bf16 %v381_v3, %v380_v2  ;;  %v1373_v7 = vld [vmem:[%s1352_s13] sm:$0xff]  ;;  %v1376_v8 = vld [vmem:[%s1352_s13 + $0x8] sm:$0xff]  ;;  %v999_v9 = vpack.c.bf16 %v383_v6, %v382_v4  ;;  %v1379_v10 = vld [vmem:[%s1352_s13 + $0x10] sm:$0xff]  ;;  %vm405_vm5 = vcmask 1044484   ;;  %vm407_vm6 = vcmask 1045509   ;;  %s948_s14 = sshll.u32 %s1348_s29, 3 }
  0x3d   : > { %v1382_v11 = vld [vmem:[%s1352_s13 + $0x18] sm:$0xff]  ;;  %v1385_v12 = vld [vmem:[%s1352_s13 + $0x20] sm:$0xff]  ;;  %v300_v13 = vsel %vm299_vm1, %v1373_v7, 0.0  ;;  %v301_v14 = vsel %vm299_vm1, %v1376_v8, 0.0  ;;  %v1392_v15 = vld [vmem:[%s1352_s13 + $0x28] sm:$0xff]  ;;  %v309_v19 = vsel %vm299_vm1, %v1379_v10, 0.0 }
  0x3e   : > { %997 = vmatpush3.bf16.msra.mxu0 %v996_v5  ;;  %v1395_v16 = vld [vmem:[%s1352_s13 + $0x30] sm:$0xff]  ;;  %v1398_v17 = vld [vmem:[%s1352_s13 + $0x38] sm:$0xff]  ;;  %v302_v18 = vadd.f32 %v301_v14, %v300_v13  ;;  %v310_v20 = vsel %vm299_vm1, %v1382_v11, 0.0  ;;  %v318_v21 = vsel %vm299_vm1, %v1385_v12, 0.0  ;;  %v1408_v22 = vld [vmem:[%s1352_s13 + $0x40] sm:$0xff]  ;;  %v319_v26 = vsel %vm299_vm1, %v1392_v15, 0.0 }
  0x3f   : > { %998 = vmatprep.subr.bf16.mxu0 %v1204_v0  ;;  %v1411_v23 = vld [vmem:[%s1352_s13 + $0x48] sm:$0xff]  ;;  %v1414_v24 = vld [vmem:[%s1352_s13 + $0x50] sm:$0xff]  ;;  %v311_v25 = vadd.f32 %v310_v20, %v309_v19  ;;  %v327_v27 = vsel %vm299_vm1, %v1395_v16, 0.0  ;;  %v328_v28 = vsel %vm299_vm1, %v1398_v17, 0.0  ;;  %v1423_v29 = vld [vmem:[%s1352_s13 + $0x58] sm:$0xff]  ;;  %v320_v33 = vadd.f32 %v319_v26, %v318_v21  ;;  %s1484_s15 = scalar_lea.vmem [#allocation6], %s948_s14 }
  0x40   : > { %v1426_v30 = vld [vmem:[%s1352_s13 + $0x60] sm:$0xff]  ;;  %v1429_v31 = vld [vmem:[%s1352_s13 + $0x68] sm:$0xff]  ;;  %v303_v32 = vrot.slane %v302_v18, 4  ;;  %v329_v34 = vadd.f32 %v328_v28, %v327_v27  ;;  %v336_v35 = vsel %vm299_vm1, %v1408_v22, 0.0  ;;  %v337_v37 = vsel %vm299_vm1, %v1411_v23, 0.0  ;;  %v1440_v40 = vld [vmem:[%s1352_s13 + $0x70] sm:$0xff] }
  0x41   : > { %v312_v36 = vrot.slane %v311_v25, 4  ;;  %v345_v38 = vsel %vm299_vm1, %v1414_v24, 0.0  ;;  %v346_v39 = vsel %vm299_vm1, %v1423_v29, 0.0  ;;  %v321_v42 = vrot.slane %v320_v33, 4  ;;  %v1447_v49 = vld [vmem:[%s1352_s13 + $0x78] sm:$0xff]  ;;  %s957_s17 = sshll.u32 %s1265_s25, 7 }
  0x42   : > { %1000 = vmatpush3.bf16.msra.mxu0 %v999_v9  ;;  %v304_v41 = vadd.f32 %v303_v32, %v302_v18  ;;  %v330_v43 = vrot.slane %v329_v34, 4  ;;  %v338_v44 = vadd.f32 %v337_v37, %v336_v35  ;;  %v347_v46 = vadd.f32 %v346_v39, %v345_v38  ;;  %s1493_s7 = scalar_lea.hbm %s1611_s6, %s957_s17  ;;  %s837_s12 = sshll.u32 %s1484_s15, 4  ;;  %s838_s12 = int_to_ptr.vmem [resolvable:$true] %s837_s12 }
  0x43   : > { %v313_v45 = vadd.f32 %v312_v36, %v311_v25  ;;  %v354_v47 = vsel %vm299_vm1, %v1426_v30, 0.0  ;;  %v355_v48 = vsel %vm299_vm1, %v1429_v31, 0.0  ;;  %v322_v51 = vadd.f32 %v321_v42, %v320_v33  ;;  %s811_s13 = scalar_lea.sflag [#allocation7], %s1348_s29  ;;  %s1101_s16 = scalar_lea.vmem %s838_s12, 128 }
  0x44   : > { %v305_v50 = vrot.slane %v304_v41, 2  ;;  %v331_v52 = vadd.f32 %v330_v43, %v329_v34  ;;  %v339_v53 = vrot.slane %v338_v44, 4  ;;  %v348_v55 = vrot.slane %v347_v46, 4  ;;  %p1102_p6 = scmp.ne.s32.totalorder %s838_s12, %s1101_s16  ;;  %p1618_p11 = scmp.ne.s32.totalorder %s1615_s9, 0 }
  0x45   : > { %v314_v54 = vrot.slane %v313_v45, 2  ;;  %v356_v56 = vadd.f32 %v355_v48, %v354_v47  ;;  %v363_v57 = vsel %vm299_vm1, %v1440_v40, 0.0  ;;  %v323_v59 = vrot.slane %v322_v51, 2  ;;  %s1207_s18 = smov [#allocation6]  }
  0x46   : > { %v306_v58 = vadd.f32 %v305_v50, %v304_v41  ;;  %v332_v60 = vrot.slane %v331_v52, 2  ;;  %v340_v61 = vadd.f32 %v339_v53, %v338_v44  ;;  %v349_v63 = vadd.f32 %v348_v55, %v347_v46  ;;  %p1103_p12 = pnand %p1102_p6, %p1618_p11  ;;  %s1105_s8 = sshll.u32 %s1207_s18, 4  ;;  %s1106_s8 = int_to_ptr.vmem [resolvable:$false] %s1105_s8 }
  0x47   : > { %v315_v62 = vadd.f32 %v314_v54, %v313_v45  ;;  %v357_v1 = vrot.slane %v356_v56, 4  ;;  %v364_v2 = vsel %vm299_vm1, %v1447_v49, 0.0  ;;  %v324_v4 = vadd.f32 %v323_v59, %v322_v51  ;;  %s1107_s19 = scalar_lea.vmem %s1106_s8, 256  ;;  %p1108_p8 = scmp.lt.s32.totalorder %s838_s12, %s1106_s8 }
  0x48   : > { %v307_v3 = vrot.slane %v306_v58, 1  ;;  %v333_v5 = vadd.f32 %v332_v60, %v331_v52  ;;  %v341_v6 = vrot.slane %v340_v61, 2  ;;  %v350_v13 = vrot.slane %v349_v63, 2  ;;  %p1104_p13 = pneg %p1103_p12  ;;  %p1109_p10 = scmp.lt.s32.totalorder %s1107_s19, %s1101_s16 }
  0x49   : > { %v316_v9 = vrot.slane %v315_v62, 1  ;;  %v358_v14 = vadd.f32 %v357_v1, %v356_v56  ;;  %v365_v18 = vadd.f32 %v364_v2, %v363_v57  ;;  %v325_v20 = vrot.slane %v324_v4, 1  ;;  %v512_v1 = vld [vmem:[%s1608_s3] sm:$0xff]  ;;  %v513_v2 = vld [vmem:[%s1608_s3 + $0x8] sm:$0xff] }
  0x4a   : > { %v308_v19 = vadd.f32 %v307_v3, %v306_v58  ;;  %v334_v21 = vrot.slane %v333_v5, 1  ;;  %v342_v25 = vadd.f32 %v341_v6, %v340_v61  ;;  %v351_v27 = vadd.f32 %v350_v13, %v349_v63  ;;  %p1110_p0 = por %p1109_p10, %p1108_p8 }
  0x4b   : > { %v317_v26 = vadd.f32 %v316_v9, %v315_v62  ;;  %v359_v28 = vrot.slane %v358_v14, 2  ;;  %v366_v32 = vrot.slane %v365_v18, 4  ;;  %v326_v33 = vadd.f32 %v325_v20, %v324_v4  ;;  %v514_v4 = vld [vmem:[%s1608_s3 + $0x10] sm:$0xff]  ;;  %v950_v9 = vld [vmem:[%s1607_s2] ss:$0 sm:$0xff] }
  0x4c   : > { %v335_v34 = vadd.f32 %v334_v21, %v333_v5  ;;  %v343_v35 = vrot.slane %v342_v25, 1  ;;  %v372_v36 = vmul.f32 0.0625, %v308_v19  ;;  %v352_v37 = vrot.slane %v351_v27, 1  ;;  %v515_v5 = vld [vmem:[%s1608_s3 + $0x18] sm:$0xff]  ;;  %p1111_p2 = pnand %p1110_p0, %p1104_p13 }
  0x4d   : > { %v360_v38 = vadd.f32 %v359_v28, %v358_v14  ;;  %v367_v39 = vadd.f32 %v366_v32, %v365_v18  ;;  %v373_v41 = vmul.f32 0.0625, %v317_v26  ;;  %v374_v43 = vmul.f32 0.0625, %v326_v33 }
  0x4e   : > { %v344_v42 = vadd.f32 %v343_v35, %v342_v25  ;;  %v375_v44 = vmul.f32 0.0625, %v335_v34  ;;  %v353_v45 = vadd.f32 %v352_v37, %v351_v27  ;;  %vm409_vm7 = vcmask 1046534  }
  0x4f   : > { %v361_v46 = vrot.slane %v360_v38, 1  ;;  %v368_v47 = vrot.slane %v367_v39, 2  ;;  %v400_v48 = vsel %vm399_vm2, %v373_v41, %v372_v36  ;;  %vm411_vm8 = vcmask 1047559  }
  0x50   : > { %v376_v50 = vmul.f32 0.0625, %v344_v42  ;;  %v402_v51 = vsel %vm401_vm3, %v374_v43, %v400_v48  ;;  %v377_v54 = vmul.f32 0.0625, %v353_v45  ;;  %v1002_v3 = vpack.c.bf16 %v513_v2, %v512_v1 }
  0x51   : > { %v362_v52 = vadd.f32 %v361_v46, %v360_v38  ;;  %v369_v53 = vadd.f32 %v368_v47, %v367_v39  ;;  %v404_v55 = vsel %vm403_vm4, %v375_v44, %v402_v51  ;;  %v1005_v6 = vpack.c.bf16 %v515_v5, %v514_v4  ;;  %v952_v51 = vld [vmem:[%s1609_s4] ss:$0 sm:$0xff] }
  0x52   : > { %v406_v56 = vsel %vm405_vm5, %v376_v50, %v404_v55  ;;  %1003 = vmatpush3.bf16.msra.mxu1 %v1002_v3  ;;  %vm803_vm10 = vcmask 130048  }
  0x53   : > { %v370_v57 = vrot.slane %v369_v53, 1  ;;  %v378_v58 = vmul.f32 0.0625, %v362_v52  ;;  %v408_v59 = vsel %vm407_vm6, %v377_v54, %v406_v56  ;;  %1004 = vmatprep.subr.bf16.mxu1 %v1204_v0 }
  0x55   : > { %v371_v60 = vadd.f32 %v370_v57, %v369_v53  ;;  %v410_v61 = vsel %vm409_vm7, %v378_v58, %v408_v59  ;;  %v602_v58 = vlaneseq }
  0x56   : > { %1006 = vmatpush3.bf16.msra.mxu1 %v1005_v6 }
  0x57   : > { %v379_v62 = vmul.f32 0.0625, %v371_v60  ;;  %v603_v59 = vshrl.u32 %v602_v58, 7 }
  0x59   : > { %v412_v63 = vsel %vm411_vm8, %v379_v62, %v410_v61  ;;  %v615_v60 = vsub.s32 1, %v603_v59  ;;  %v604_v61 = vsub.s32 0, %v603_v59  ;;  %v626_v2 = vsub.s32 2, %v603_v59 }
  0x5a   : > { %982 = vmatmul.mubr.msk.f32.vlgmr.msra.gmra.mrb[0].mxu0 %vm299_vm1, %v412_v63  ;;  %v637_v4 = vsub.s32 3, %v603_v59  ;;  %v648_v6 = vsub.s32 4, %v603_v59 }
 0x12d   : > { %v481_v13 = vpop.f32.mrb[0].mxu0 }
 0x12e   : > { %v482_v14 = vadd.f32 %v950_v9, %v481_v13  ;;  %v983_v18 = vpop.f32.mrb[1].mxu0  ;;  %v659_v13 = vsub.s32 5, %v603_v59 }
 0x12f   : > { %v670_v18 = vsub.s32 6, %v603_v59 }
 0x130   : > { %v486_v19 = vmul.f32 0.70710677, %v482_v14  ;;  %v485_v47 = vmul.f32 0.5, %v482_v14 }
 0x132   : > { %v487_v20 = vand.u32 2147483647, %v486_v19  ;;  %vm507_vm9 = vcmp.lt.f32.partialorder %v486_v19, 0.0 }
 0x134   : > { %v488_v0 = vmul.f32 0.3275911, %v487_v20  ;;  %v501_v25 = vsub.f32 0.0, %v487_v20 }
 0x136   : > { %v489_v21 = vadd.f32 1.0, %v488_v0  ;;  %v502_v27 = vmul.f32 %v501_v25, %v487_v20  ;;  %v681_v20 = vsub.s32 7, %v603_v59 }
 0x138   : > { %1063 = vrcp.f32 %v489_v21  ;;  %v503_v33 = vmul.f32 1.442695, %v502_v27 }
 0x13a   : > { %1065 = vpow2.f32 %v503_v33 }
 0x142   : > { %v1064_v26 = vpop.eup %1063 }
 0x143   : > { %v492_v28 = vmul.f32 1.0614054, %v1064_v26 }
 0x144   : > { %v1066_v42 = vpop.eup %1065 }
 0x145   : > { %v493_v32 = vadd.f32 -1.4531521, %v492_v28 }
 0x147   : > { %v494_v34 = vmul.f32 %v1064_v26, %v493_v32 }
 0x149   : > { %v495_v35 = vadd.f32 1.4214138, %v494_v34 }
 0x14b   : > { %v496_v36 = vmul.f32 %v1064_v26, %v495_v35 }
 0x14d   : > { %v497_v37 = vadd.f32 -0.28449672, %v496_v36 }
 0x14f   : > { %v498_v38 = vmul.f32 %v1064_v26, %v497_v37 }
 0x151   : > { %v499_v39 = vadd.f32 0.2548296, %v498_v38 }
 0x153   : > { %v500_v41 = vmul.f32 %v1064_v26, %v499_v39 }
 0x155   : > { %v505_v43 = vmul.f32 %v1066_v42, %v500_v41 }
 0x157   : > { %v506_v44 = vsub.f32 1.0, %v505_v43 }
 0x159   : > { %v508_v45 = vsub.f32 0.0, %v506_v44 }
 0x15b   : > { %v509_v46 = vsel %vm507_vm9, %v508_v45, %v506_v44 }
 0x15c   : > { %v510_v48 = vadd.f32 1.0, %v509_v46 }
 0x15e   : > { %v511_v50 = vmul.f32 %v510_v48, %v485_v47 }
 0x160   : > { %993 = vmatmul.mubr.msk.f32.vlgmr.msra.gmra.mrb[0].mxu1 %vm299_vm1, %v511_v50 }
 0x233   : > { %v592_v52 = vpop.f32.mrb[0].mxu1 }
 0x234   : > { %v593_v53 = vadd.f32 %v952_v51, %v592_v52  ;;  %v994_v54 = vpop.f32.mrb[1].mxu1 }
 0x236   : > { %v954_v55 = vmul.f32 -1.442695, %v593_v53 }
 0x238   : > { %1067 = vpow2.f32 %v954_v55 }
 0x242   : > { %v1068_v56 = vpop.eup %1067 }
 0x243   : > { %v599_v57 = vadd.f32 1.0, %v1068_v56 }
 0x245   : > { %1069 = vrcp.f32 %v599_v57 }
 0x24f   : > { %v1070_v62 = vpop.eup %1069 }
 0x250   : > { %v616_v63 = vrot.slane %v1070_v62, %v615_v60  ;;  %v605_v1 = vrot.slane %v1070_v62, %v604_v61  ;;  %804 = vst.msk [vmem:[%s1484_s15] sm:$0xff] %vm803_vm10, %v1070_v62  ;;  %v627_v3 = vrot.slane %v1070_v62, %v626_v2  ;;  %v638_v5 = vrot.slane %v1070_v62, %v637_v4 }
 0x251   : > { %v649_v9 = vrot.slane %v1070_v62, %v648_v6  ;;  %v660_v14 = vrot.slane %v1070_v62, %v659_v13  ;;  %v671_v19 = vrot.slane %v1070_v62, %v670_v18  ;;  %v682_v0 = vrot.slane %v1070_v62, %v681_v20 }
 0x252   : > { %618 = vbcast.lane.b32.xlu1 %v616_v63, 256  ;;  %607 = vbcast.lane.b32.xlu0 %v605_v1, 256 }
 0x256   : > { %622 = vbcast.lane.b32.xlu1 %v616_v63, 264  ;;  %611 = vbcast.lane.b32.xlu0 %v605_v1, 264 }
 0x25a   : > { %633 = vbcast.lane.b32.xlu1 %v627_v3, 264  ;;  %629 = vbcast.lane.b32.xlu0 %v627_v3, 256 }
 0x25e   : > { %644 = vbcast.lane.b32.xlu1 %v638_v5, 264  ;;  %640 = vbcast.lane.b32.xlu0 %v638_v5, 256 }
 0x262   : > { %655 = vbcast.lane.b32.xlu1 %v649_v9, 264  ;;  %651 = vbcast.lane.b32.xlu0 %v649_v9, 256 }
 0x266   : > { %666 = vbcast.lane.b32.xlu1 %v660_v14, 264  ;;  %662 = vbcast.lane.b32.xlu0 %v660_v14, 256 }
 0x26a   : > { %677 = vbcast.lane.b32.xlu1 %v671_v19, 264  ;;  %673 = vbcast.lane.b32.xlu0 %v671_v19, 256 }
 0x26e   : > { %688 = vbcast.lane.b32.xlu1 %v682_v0, 264  ;;  %684 = vbcast.lane.b32.xlu0 %v682_v0, 256 }
 0x26f   : > { %1114 = shalt.err (!%p1111_p2)
}
 0x270   : > { %s1115_s20 = scalar_lea.hbm %s1493_s7, 128  ;;  %s1119_s26 = scalar_lea.hbm %s1611_s6, 256 }
 0x271   : > { %p1116_p4 = scmp.ne.s32.totalorder %s1493_s7, %s1115_s20  ;;  %p1120_p9 = scmp.lt.u32.totalorder %s1493_s7, %s1611_s6 }
 0x272   : > { %p1121_p1 = scmp.lt.u32.totalorder %s1119_s26, %s1115_s20  ;;  %p1123_p6 = scmp.lt.u32.totalorder %s1115_s20, %s1493_s7 }
 0x273   : > { %p1117_p5 = pnand %p1116_p4, %p1618_p11 }
 0x274   : > { %p1122_p3 = por %p1121_p1, %p1120_p9 }
 0x275   : > { %p1118_p7 = pneg %p1117_p5 }
 0x276   : > { %p1124_p12 = por %p1123_p6, %p1122_p3 }
 0x278   : > { %p1125_p13 = pnand %p1124_p12, %p1118_p7 }
 0x27a   : > { %1128 = shalt.err (!%p1125_p13)
}
 0x27b   : > { %1010 = dma.vmem_to_hbm [thread:$0]  (%p1618_p11), %s838_s12, 128, %s1493_s7, %s811_s13  }
 0x27c   : > { %s274_s7 = scalar_lea.vmem [#allocation5], %s948_s14  ;;  %s1559_s8 = scalar_lea.hbm %s1610_s5, %s957_s17 }
 0x27d   : > { %s824_s12 = sshll.u32 %s274_s7, 4  ;;  %s806_s14 = scalar_lea.sflag [#allocation4], %s1348_s29  ;;  %s1561_s12 = int_to_ptr.vmem [resolvable:$true] %s824_s12 }
 0x27e   : > { %s1129_s19 = scalar_lea.vmem %s1561_s12, 128  ;;  %s1208_s25 = smov [#allocation5]  }
 0x27f   : > { %p1130_p8 = scmp.ne.s32.totalorder %s1561_s12, %s1129_s19  ;;  %s1133_s20 = sshll.u32 %s1208_s25, 4  ;;  %s1134_s20 = int_to_ptr.vmem [resolvable:$false] %s1133_s20 }
 0x280   : > { %s1135_s17 = scalar_lea.vmem %s1134_s20, 256  ;;  %p1136_p2 = scmp.lt.s32.totalorder %s1561_s12, %s1134_s20 }
 0x281   : > { %p1131_p10 = pnand %p1130_p8, %p1618_p11  ;;  %p1137_p4 = scmp.lt.s32.totalorder %s1135_s17, %s1129_s19 }
 0x283   : > { %p1132_p0 = pneg %p1131_p10  ;;  %p1138_p5 = por %p1137_p4, %p1136_p2 }
 0x285   : > { %p1139_p7 = pnand %p1138_p5, %p1132_p0 }
 0x2c4   : > { %v619_v21 = vpop.permute.xlu1 %618  ;;  %v608_v25 = vpop.permute.xlu0 %607 }
 0x2c5   : > { %v692_v26 = vmul.f32 %v619_v21, %v1379_v10  ;;  %v690_v32 = vmul.f32 %v608_v25, %v1373_v7 }
 0x2c7   : > { %v715_v37 = vsel %vm299_vm1, %v692_v26, 0.0  ;;  %v706_v41 = vsel %vm299_vm1, %v690_v32, 0.0 }
 0x2c8   : > { %v623_v27 = vpop.permute.xlu1 %622  ;;  %v612_v28 = vpop.permute.xlu0 %611 }
 0x2c9   : > { %v693_v33 = vmul.f32 %v623_v27, %v1382_v11  ;;  %v691_v34 = vmul.f32 %v612_v28, %v1376_v8 }
 0x2cb   : > { %v716_v35 = vsel %vm299_vm1, %v693_v33, 0.0  ;;  %v707_v36 = vsel %vm299_vm1, %v691_v34, 0.0 }
 0x2cc   : > { %v634_v38 = vpop.permute.xlu1 %633  ;;  %v630_v39 = vpop.permute.xlu0 %629  ;;  %v717_v42 = vadd.f32 %v716_v35, %v715_v37  ;;  %v708_v7 = vadd.f32 %v707_v36, %v706_v41 }
 0x2cd   : > { %v695_v10 = vmul.f32 %v634_v38, %v1392_v15  ;;  %v694_v43 = vmul.f32 %v630_v39, %v1385_v12 }
 0x2ce   : > { %v718_v47 = vrot.slane %v717_v42, 4  ;;  %v709_v51 = vrot.slane %v708_v7, 4 }
 0x2cf   : > { %v725_v11 = vsel %vm299_vm1, %v695_v10, 0.0  ;;  %v724_v8 = vsel %vm299_vm1, %v694_v43, 0.0 }
 0x2d0   : > { %v726_v44 = vadd.f32 %v725_v11, %v724_v8  ;;  %v645_v45 = vpop.permute.xlu1 %644  ;;  %v641_v46 = vpop.permute.xlu0 %640  ;;  %v719_v56 = vadd.f32 %v718_v47, %v717_v42  ;;  %v710_v59 = vadd.f32 %v709_v51, %v708_v7 }
 0x2d1   : > { %v697_v48 = vmul.f32 %v645_v45, %v1398_v17  ;;  %v696_v50 = vmul.f32 %v641_v46, %v1395_v16 }
 0x2d2   : > { %v727_v52 = vrot.slane %v726_v44, 4  ;;  %v720_v2 = vrot.slane %v719_v56, 2  ;;  %v711_v6 = vrot.slane %v710_v59, 2 }
 0x2d3   : > { %v734_v53 = vsel %vm299_vm1, %v697_v48, 0.0  ;;  %v733_v15 = vsel %vm299_vm1, %v696_v50, 0.0 }
 0x2d4   : > { %v735_v12 = vadd.f32 %v734_v53, %v733_v15  ;;  %v656_v54 = vpop.permute.xlu1 %655  ;;  %v652_v55 = vpop.permute.xlu0 %651  ;;  %v728_v61 = vadd.f32 %v727_v52, %v726_v44  ;;  %v721_v0 = vadd.f32 %v720_v2, %v719_v56 }
 0x2d5   : > { %v699_v57 = vmul.f32 %v656_v54, %v1411_v23  ;;  %v698_v58 = vmul.f32 %v652_v55, %v1408_v22 }
 0x2d6   : > { %v736_v60 = vrot.slane %v735_v12, 4  ;;  %v729_v23 = vrot.slane %v728_v61, 2  ;;  %v722_v39 = vrot.slane %v721_v0, 1 }
 0x2d7   : > { %v743_v17 = vsel %vm299_vm1, %v699_v57, 0.0  ;;  %v742_v16 = vsel %vm299_vm1, %v698_v58, 0.0 }
 0x2d8   : > { %v737_v62 = vadd.f32 %v736_v60, %v735_v12  ;;  %v667_v63 = vpop.permute.xlu1 %666  ;;  %v663_v1 = vpop.permute.xlu0 %662  ;;  %v744_v3 = vadd.f32 %v743_v17, %v742_v16  ;;  %v723_v48 = vadd.f32 %v722_v39, %v721_v0 }
 0x2d9   : > { %v701_v4 = vmul.f32 %v667_v63, %v1423_v29  ;;  %v700_v5 = vmul.f32 %v663_v1, %v1414_v24  ;;  %v712_v29 = vadd.f32 %v711_v6, %v710_v59  ;;  %v730_v24 = vadd.f32 %v729_v23, %v728_v61 }
 0x2da   : > { %v745_v9 = vrot.slane %v744_v3, 4  ;;  %v738_v14 = vrot.slane %v737_v62, 2  ;;  %v779_v55 = vmul.f32 0.0625, %v723_v48 }
 0x2db   : > { %v752_v22 = vsel %vm299_vm1, %v701_v4, 0.0  ;;  %v751_v13 = vsel %vm299_vm1, %v700_v5, 0.0  ;;  %v731_v7 = vrot.slane %v730_v24, 1 }
 0x2dc   : > { %v753_v18 = vadd.f32 %v752_v22, %v751_v13  ;;  %v678_v19 = vpop.permute.xlu1 %677  ;;  %v674_v20 = vpop.permute.xlu0 %673  ;;  %v746_v21 = vadd.f32 %v745_v9, %v744_v3  ;;  %v739_v34 = vadd.f32 %v738_v14, %v737_v62 }
 0x2dd   : > { %v703_v25 = vmul.f32 %v678_v19, %v1429_v31  ;;  %v702_v26 = vmul.f32 %v674_v20, %v1426_v30  ;;  %v713_v30 = vrot.slane %v712_v29, 1  ;;  %v732_v15 = vadd.f32 %v731_v7, %v730_v24 }
 0x2de   : > { %v754_v27 = vrot.slane %v753_v18, 4  ;;  %v747_v28 = vrot.slane %v746_v21, 2  ;;  %v740_v44 = vrot.slane %v739_v34, 1 }
 0x2df   : > { %v761_v32 = vsel %vm299_vm1, %v703_v25, 0.0  ;;  %v760_v33 = vsel %vm299_vm1, %v702_v26, 0.0  ;;  %v714_v51 = vadd.f32 %v713_v30, %v712_v29  ;;  %v780_v61 = vmul.f32 0.0625, %v732_v15 }
 0x2e0   : > { %v755_v35 = vadd.f32 %v754_v27, %v753_v18  ;;  %v762_v36 = vadd.f32 %v761_v32, %v760_v33  ;;  %v689_v37 = vpop.permute.xlu1 %688  ;;  %v685_v38 = vpop.permute.xlu0 %684  ;;  %v748_v41 = vadd.f32 %v747_v28, %v746_v21 }
 0x2e1   : > { %v705_v42 = vmul.f32 %v689_v37, %v1447_v49  ;;  %v704_v31 = vmul.f32 %v685_v38, %v1440_v40  ;;  %v741_v40 = vadd.f32 %v740_v44, %v739_v34  ;;  %v778_v57 = vmul.f32 0.0625, %v714_v51 }
 0x2e2   : > { %v756_v10 = vrot.slane %v755_v35, 2  ;;  %v763_v43 = vrot.slane %v762_v36, 4  ;;  %v749_v50 = vrot.slane %v748_v41, 1 }
 0x2e3   : > { %v770_v11 = vsel %vm299_vm1, %v705_v42, 0.0  ;;  %v769_v8 = vsel %vm299_vm1, %v704_v31, 0.0  ;;  %v781_v17 = vmul.f32 0.0625, %v741_v40  ;;  %v794_v1 = vsel %vm399_vm2, %v779_v55, %v778_v57 }
 0x2e4   : > { %v757_v45 = vadd.f32 %v756_v10, %v755_v35  ;;  %v764_v46 = vadd.f32 %v763_v43, %v762_v36  ;;  %v771_v47 = vadd.f32 %v770_v11, %v769_v8  ;;  %v750_v56 = vadd.f32 %v749_v50, %v748_v41 }
 0x2e5   : > { %v795_v4 = vsel %vm401_vm3, %v780_v61, %v794_v1 }
 0x2e6   : > { %v758_v52 = vrot.slane %v757_v45, 1  ;;  %v765_v53 = vrot.slane %v764_v46, 2  ;;  %v772_v49 = vrot.slane %v771_v47, 4  ;;  %v782_v63 = vmul.f32 0.0625, %v750_v56 }
 0x2e7   : > { %v796_v6 = vsel %vm403_vm4, %v781_v17, %v795_v4 }
 0x2e8   : > { %v766_v12 = vadd.f32 %v765_v53, %v764_v46  ;;  %v773_v54 = vadd.f32 %v772_v49, %v771_v47  ;;  %v759_v58 = vadd.f32 %v758_v52, %v757_v45  ;;  %v797_v9 = vsel %vm405_vm5, %v782_v63, %v796_v6 }
 0x2ea   : > { %v767_v59 = vrot.slane %v766_v12, 1  ;;  %v774_v60 = vrot.slane %v773_v54, 2  ;;  %v783_v2 = vmul.f32 0.0625, %v759_v58 }
 0x2ec   : > { %v768_v16 = vadd.f32 %v767_v59, %v766_v12  ;;  %v775_v62 = vadd.f32 %v774_v60, %v773_v54  ;;  %v798_v13 = vsel %vm407_vm6, %v783_v2, %v797_v9 }
 0x2ee   : > { %v776_v3 = vrot.slane %v775_v62, 1  ;;  %v784_v5 = vmul.f32 0.0625, %v768_v16 }
 0x2f0   : > { %v777_v23 = vadd.f32 %v776_v3, %v775_v62  ;;  %v799_v14 = vsel %vm409_vm7, %v784_v5, %v798_v13 }
 0x2f2   : > { %v785_v22 = vmul.f32 0.0625, %v777_v23 }
 0x2f4   : > { %v800_v18 = vsel %vm411_vm8, %v785_v22, %v799_v14 }
 0x2f5   : > { %802 = vst.msk [vmem:[%s274_s7] sm:$0xff] %vm299_vm1, %v800_v18 }
 0x2f6   : > { %1142 = shalt.err (!%p1139_p7)
}
 0x2f7   : > { %s1143_s29 = scalar_lea.hbm %s1559_s8, 128  ;;  %s1147_s26 = scalar_lea.hbm %s1610_s5, 256 }
 0x2f8   : > { %p1144_p9 = scmp.ne.s32.totalorder %s1559_s8, %s1143_s29  ;;  %p1148_p6 = scmp.lt.u32.totalorder %s1559_s8, %s1610_s5 }
 0x2f9   : > { %p1149_p12 = scmp.lt.u32.totalorder %s1147_s26, %s1143_s29  ;;  %p1151_p8 = scmp.lt.u32.totalorder %s1143_s29, %s1559_s8 }
 0x2fa   : > { %p1145_p1 = pnand %p1144_p9, %p1618_p11 }
 0x2fb   : > { %p1150_p13 = por %p1149_p12, %p1148_p6 }
 0x2fc   : > { %p1146_p3 = pneg %p1145_p1 }
 0x2fd   : > { %p1152_p10 = por %p1151_p8, %p1150_p13 }
 0x2ff   : > { %p1153_p0 = pnand %p1152_p10, %p1146_p3 }
 0x301   : > { %1156 = shalt.err (!%p1153_p0)
}
 0x302   : > { %1009 = dma.vmem_to_hbm [thread:$0]  (%p1618_p11), %s1561_s12, 128, %s1559_s8, %s806_s14  }
 0x303 PF: > { %s849_s7 = sand.u32 1, %s1187_s21   ;;  %p1619_p2 = scmp.ne.s32.totalorder %s1616_s10, 0 }
 0x304   : > { %p1620_p4 = scmp.ge.s32.totalorder %s1199_s24, 2  ;;  %s850_s13 = scalar_lea.sflag [#allocation4], %s849_s7 }
 0x306   : > { %p1018_p5 = pnand %p1620_p4, %p1619_p2 }
 0x308   : > { %1178 = dma.done.wait (!%p1018_p5), %s850_s13, 128  }
 0x309   : > { %1180 = vsyncadd (!%p1018_p5), %s850_s13, 4294967168  ;;  %s859_s16 = scalar_lea.sflag [#allocation7], %s849_s7 }
 0x30a   : > { %1182 = dma.done.wait (!%p1018_p5), %s859_s16, 128  }
 0x30b   : > { %1184 = vsyncadd (!%p1018_p5), %s859_s16, 4294967168  ;;  %p23_p11 = scmp.ge.s32.totalorder %s1269_s27, 4   ;;  %s1621_s21 = smov %s1191_s22 }
 0x30c   : > { %s1622_s22 = smov %s1195_s23  ;;  %s1623_s23 = smov %s1281_s30 }
 0x30d   : > { %s1624_s24 = smov %s1269_s27  ;;  %25 = sbr.rel (!%p23_p11) target bundleno = 7 (0x7), region = 102 }
 0x314   :  { %864 = vsyncpa [#allocation3], 1 }
 0x315   :  { %866 = vsyncpa [#allocation3 + $0x1], 1 }
 0x316   :  { %867 = vsyncpa [#allocation4], 1 }
 0x317   :  { %869 = vsyncpa [#allocation4 + $0x1], 1 }
 0x318   :  { %870 = vsyncpa [#allocation7], 1 }
 0x319   :  { %872 = vsyncpa [#allocation7 + $0x1], 1 }

</bundles_post_ra>
